<compile_context>
chip_gen: v5e
topology: v5e:2x2
jax: 0.10.0
libtpu: 0.0.40
codegen_flags: <defaults>
</compile_context>

<pallas_src>
import functools

import jax
import jax.numpy as jnp
from jax.experimental import pallas as pl
from jax.experimental.pallas import tpu as pltpu


def _round_up(x, m):
    return ((x + m - 1) // m) * m


def _pick_tile(dim, candidates=(512, 256, 128)):
    """Pad `dim` to a multiple of 128 and pick the largest tile that divides it."""
    padded = _round_up(dim, 128)
    for t in candidates:
        if padded % t == 0:
            return t, padded
    return 128, padded  # unreachable: 128 always divides a 128-multiple


def _pick_m_tile(batch):
    """Batch tile: multiple of 8 (sublane), capped at 256."""
    if batch <= 256:
        tm = _round_up(batch, 8)
        return tm, tm
    return 256, _round_up(batch, 256)


def _linear_argmax_kernel(x_ref, w_ref, b_ref, z_ref, arg_ref,
                          acc_ref, max_ref, idx_ref, *, tn, out_size):
    j = pl.program_id(1)          # class-tile index
    k = pl.program_id(2)          # reduction-tile index (innermost)
    nj = pl.num_programs(1)
    nk = pl.num_programs(2)

    @pl.when(k == 0)
    def _():
        acc_ref[...] = jnp.zeros_like(acc_ref)

    # MXU matmul (operands may be f32 or bf16; accumulate in f32).
    acc_ref[...] += jnp.dot(x_ref[...], w_ref[...],
                            preferred_element_type=jnp.float32)

    @pl.when(k == nk - 1)
    def _():
        # Bias added once per (i, j) output tile, then lane-dense f32 store.
        z = acc_ref[...] + b_ref[...]
        z_ref[...] = z.astype(z_ref.dtype)

        # ---- fused argmax over the class axis (predict() path) ----
        tm = z.shape[0]
        col = j * tn + jax.lax.broadcasted_iota(jnp.int32, (tm, tn), 1)
        zm = jnp.where(col < out_size, z, -jnp.inf)          # mask padded classes
        tile_max = jnp.max(zm, axis=-1, keepdims=True)
        # smallest column index achieving the max -> torch-style first-occurrence
        tile_arg = jnp.min(jnp.where(zm == tile_max, col, jnp.int32(2 ** 30)),
                           axis=-1, keepdims=True)

        @pl.when(j == 0)
        def _():
            max_ref[...] = tile_max
            idx_ref[...] = tile_arg

        @pl.when(j > 0)
        def _():
            better = tile_max > max_ref[...]                 # earlier j wins ties
            idx_ref[...] = jnp.where(better, tile_arg, idx_ref[...])
            max_ref[...] = jnp.maximum(tile_max, max_ref[...])

        @pl.when(j == nj - 1)
        def _():
            arg_ref[...] = idx_ref[...]


def _forward_impl(x, w_t, b, *, use_bf16=False):
    batch, in_size = x.shape
    k2, out_size = w_t.shape
    assert k2 == in_size
    b2d = b.reshape(1, out_size).astype(jnp.float32)

    tm, m_pad = _pick_m_tile(batch)
    tk, k_pad = _pick_tile(in_size)
    tn, n_pad = _pick_tile(out_size)

    # Zero-pad to tile multiples (zeros contribute nothing to the matmul).
    x_p = jnp.pad(x, ((0, m_pad - batch), (0, k_pad - in_size)))
    w_p = jnp.pad(w_t, ((0, k_pad - in_size), (0, n_pad - out_size)))
    b_p = jnp.pad(b2d, ((0, 0), (0, n_pad - out_size)))

    if use_bf16:  # bf16 MXU operands (v6e/v7x); halves input HBM/VMEM bytes.
        x_p = x_p.astype(jnp.bfloat16)
        w_p = w_p.astype(jnp.bfloat16)

    grid = (m_pad // tm, n_pad // tn, k_pad // tk)

    kernel = functools.partial(_linear_argmax_kernel, tn=tn, out_size=out_size)

    itemsize = 2 if use_bf16 else 4
    cost = pl.CostEstimate(
        flops=2 * m_pad * k_pad * n_pad,
        transcendentals=0,
        bytes_accessed=itemsize * (m_pad * k_pad + k_pad * n_pad)
        + 4 * (m_pad * n_pad + n_pad + m_pad),
    )

    z_pad, arg_pad = pl.pallas_call(
        kernel,
        out_shape=(jax.ShapeDtypeStruct((m_pad, n_pad), jnp.float32),
                   jax.ShapeDtypeStruct((m_pad, 1), jnp.int32)),
        grid=grid,
        in_specs=[
            pl.BlockSpec((tm, tk), lambda i, j, k: (i, k)),   # X
            pl.BlockSpec((tk, tn), lambda i, j, k: (k, j)),   # W (pre-transposed)
            pl.BlockSpec((1, tn), lambda i, j, k: (0, j)),    # bias
        ],
        out_specs=[
            pl.BlockSpec((tm, tn), lambda i, j, k: (i, j)),   # Z
            pl.BlockSpec((tm, 1), lambda i, j, k: (i, 0)),    # argmax (per batch row)
        ],
        scratch_shapes=[
            pltpu.VMEM((tm, tn), jnp.float32),   # matmul accumulator
            pltpu.VMEM((tm, 1), jnp.float32),    # running max across N tiles
            pltpu.VMEM((tm, 1), jnp.int32),      # running argmax across N tiles
        ],
        compiler_params=pltpu.CompilerParams(
            # Batch axis shards across TensorCores (v7x megacore).  The N axis
            # carries the fused-argmax reduction, so it must stay "arbitrary".
            # K (matmul reduction) is last, per convention.
            dimension_semantics=("parallel", "arbitrary", "arbitrary")),
        cost_estimate=cost,
    )(x_p, w_p, b_p)

    return z_pad[:batch, :out_size], arg_pad[:batch, 0]


def multiclass_perceptron_forward(x, w_t, b, *, use_bf16=False):
    """Z = x @ w_t + b  (== torch.nn.Linear(input_size, output_size)(x))."""
    z, _ = _forward_impl(x, w_t, b, use_bf16=use_bf16)
    return z


def predict(x, w_t, b, *, use_bf16=False):
    """argmax over the class axis, computed inside the kernel epilogue."""
    _, preds = _forward_impl(x, w_t, b, use_bf16=use_bf16)
    return preds


if __name__ == "__main__":
    key = jax.random.PRNGKey(0)

    def run_case(batch, input_size, output_size, case_key):
        kx, kw, kb = jax.random.split(case_key, 3)
        bound = 1.0 / (input_size ** 0.5)
        w = jax.random.uniform(kw, (output_size, input_size), jnp.float32,
                               -bound, bound)
        b = jax.random.uniform(kb, (output_size,), jnp.float32, -bound, bound)
        x = jax.random.normal(kx, (batch, input_size), jnp.float32)
        w_t = jnp.transpose(w)  # (input_size, output_size)

        # f32 path
        z = jax.block_until_ready(multiclass_perceptron_forward(x, w_t, b))
        z_ref = x @ w_t + b[None, :]
        assert z.shape == (batch, output_size)
        assert jnp.allclose(z, z_ref, atol=1e-4, rtol=1e-4)

        # fused argmax path (compare against argmax of the kernel's own logits)
        preds = jax.block_until_ready(predict(x, w_t, b))
        assert preds.shape == (batch,)
        assert jnp.array_equal(preds, jnp.argmax(z, axis=-1).astype(preds.dtype))

        # bf16 MXU path (v6e / v7x), checked against a bf16-operand reference
        z_bf = jax.block_until_ready(
            multiclass_perceptron_forward(x, w_t, b, use_bf16=True))
        z_bf_ref = jnp.dot(x.astype(jnp.bfloat16), w_t.astype(jnp.bfloat16),
                           preferred_element_type=jnp.float32) + b[None, :]
        assert jnp.allclose(z_bf, z_bf_ref, atol=1e-2, rtol=1e-2)

    k1, k2 = jax.random.split(key)
    # Small shapes consistent with the module (single-tile grid after padding).
    run_case(batch=8, input_size=32, output_size=16, case_key=k1)
    # Non-aligned shapes exercising multi-tile N and K axes + cross-tile argmax.
    run_case(batch=48, input_size=300, output_size=300, case_key=k2)

    # TODO(synk): cost() (perceptron hinge-style loss) is training-only and not
    # part of forward(); it is left to plain JAX if ever needed.
    print("KERNEL_OK")
</pallas_src>

<mosaic_0001>
module attributes {stable_mosaic.version = 11 : i64} {
  func.func @_linear_argmax_kernel(%arg0: i32, %arg1: i32, %arg2: i32, %arg3: memref<8x128xf32, #tpu.memory_space<vmem>>, %arg4: memref<128x128xf32, #tpu.memory_space<vmem>>, %arg5: memref<1x128xf32, #tpu.memory_space<vmem>>, %arg6: memref<8x128xf32, #tpu.memory_space<vmem>>, %arg7: memref<8x1xi32, #tpu.memory_space<vmem>>, %arg8: memref<8x128xf32, #tpu.memory_space<vmem>>, %arg9: memref<8x1xf32, #tpu.memory_space<vmem>>, %arg10: memref<8x1xi32, #tpu.memory_space<vmem>>) attributes {dimension_semantics = [#tpu.dimension_semantics<parallel>, #tpu.dimension_semantics<arbitrary>, #tpu.dimension_semantics<arbitrary>], iteration_bounds = array<i64: 1, 1, 1>, scalar_prefetch = 0 : i64, scratch_operands = 3 : i64, tpu.core_type = #tpu.core_type<tc>, window_params = [{transform_indices = @transform_0, window_bounds = array<i64: 8, 128>}, {transform_indices = @transform_1, window_bounds = array<i64: 128, 128>}, {transform_indices = @transform_2, window_bounds = array<i64: 1, 128>}, {transform_indices = @transform_3, window_bounds = array<i64: 8, 128>}, {transform_indices = @transform_4, window_bounds = array<i64: 8, 1>}]} {
    %c0_i32 = arith.constant 0 : i32
    %0 = arith.cmpi eq, %arg2, %c0_i32 : i32
    %1 = arith.extui %0 : i1 to i32
    %c0_i32_0 = arith.constant 0 : i32
    %2 = arith.cmpi ne, %1, %c0_i32_0 : i32
    scf.if %2 {
      %cst_10 = arith.constant 0.000000e+00 : f32
      %12 = vector.broadcast %cst_10 : f32 to vector<8x128xf32>
      %c0_11 = arith.constant 0 : index
      %c0_12 = arith.constant 0 : index
      %13 = vector.load %arg8[%c0_11, %c0_12] : memref<8x128xf32, #tpu.memory_space<vmem>>, vector<8x128xf32>
      tpu.vector_store %arg8[%c0_11, %c0_12], %12 {strides = array<i32>} : memref<8x128xf32, #tpu.memory_space<vmem>>, vector<8x128xf32>,
    } else {
    }
    %c0 = arith.constant 0 : index
    %c0_1 = arith.constant 0 : index
    %3 = vector.load %arg8[%c0, %c0_1] : memref<8x128xf32, #tpu.memory_space<vmem>>, vector<8x128xf32>
    %c0_2 = arith.constant 0 : index
    %c0_3 = arith.constant 0 : index
    %4 = vector.load %arg3[%c0_2, %c0_3] : memref<8x128xf32, #tpu.memory_space<vmem>>, vector<8x128xf32>
    %c0_4 = arith.constant 0 : index
    %c0_5 = arith.constant 0 : index
    %5 = vector.load %arg4[%c0_4, %c0_5] : memref<128x128xf32, #tpu.memory_space<vmem>>, vector<128x128xf32>
    %cst = arith.constant dense<0.000000e+00> : vector<8x128xf32>
    %6 = tpu.matmul %4, %5, %cst {dimension_numbers = #tpu.dot_dimension_numbers<[1], [0], [0], [1], [0, 0, 1, 1], [], []>} : vector<8x128xf32>, vector<128x128xf32>, vector<8x128xf32> -> vector<8x128xf32>
    %7 = arith.addf %3, %6 : vector<8x128xf32>
    %c0_6 = arith.constant 0 : index
    %c0_7 = arith.constant 0 : index
    %8 = vector.load %arg8[%c0_6, %c0_7] : memref<8x128xf32, #tpu.memory_space<vmem>>, vector<8x128xf32>
    tpu.vector_store %arg8[%c0_6, %c0_7], %7 {strides = array<i32>} : memref<8x128xf32, #tpu.memory_space<vmem>>, vector<8x128xf32>,
    %c0_i32_8 = arith.constant 0 : i32
    %9 = arith.cmpi eq, %arg2, %c0_i32_8 : i32
    %10 = arith.extui %9 : i1 to i32
    %c0_i32_9 = arith.constant 0 : i32
    %11 = arith.cmpi ne, %10, %c0_i32_9 : i32
    scf.if %11 {
      %c0_10 = arith.constant 0 : index
      %c0_11 = arith.constant 0 : index
      %12 = vector.load %arg8[%c0_10, %c0_11] : memref<8x128xf32, #tpu.memory_space<vmem>>, vector<8x128xf32>
      %c0_12 = arith.constant 0 : index
      %c0_13 = arith.constant 0 : index
      %13 = vector.load %arg5[%c0_12, %c0_13] : memref<1x128xf32, #tpu.memory_space<vmem>>, vector<1x128xf32>
      %14 = vector.broadcast %13 : vector<1x128xf32> to vector<8x128xf32>
      %15 = arith.addf %12, %14 : vector<8x128xf32>
      %c0_14 = arith.constant 0 : index
      %c0_15 = arith.constant 0 : index
      %16 = vector.load %arg6[%c0_14, %c0_15] : memref<8x128xf32, #tpu.memory_space<vmem>>, vector<8x128xf32>
      tpu.vector_store %arg6[%c0_14, %c0_15], %15 {strides = array<i32>} : memref<8x128xf32, #tpu.memory_space<vmem>>, vector<8x128xf32>,
      %c128_i32 = arith.constant 128 : i32
      %17 = arith.muli %arg1, %c128_i32 : i32
      %18 = tpu.iota {dimensions = array<i32: 1>} : vector<8x128xi32>
      %19 = vector.broadcast %17 : i32 to vector<8x128xi32>
      %20 = arith.addi %19, %18 : vector<8x128xi32>
      %c16_i32 = arith.constant 16 : i32
      %21 = vector.broadcast %c16_i32 : i32 to vector<8x128xi32>
      %22 = arith.cmpi slt, %20, %21 : vector<8x128xi32>
      %cst_16 = arith.constant 0xFF800000 : f32
      %23 = vector.broadcast %cst_16 : f32 to vector<8x128xf32>
      %24 = arith.select %22, %15, %23 : vector<8x128xi1>, vector<8x128xf32>
      %cst_17 = arith.constant dense<0xFF800000> : vector<8xf32>
      %25 = vector.multi_reduction <maximumf>, %24, %cst_17 [1] : vector<8x128xf32> to vector<8xf32>
      %26 = vector.shape_cast %25 : vector<8xf32> to vector<8x1xf32>
      %27 = vector.broadcast %26 : vector<8x1xf32> to vector<8x128xf32>
      %28 = arith.cmpf oeq, %24, %27 : vector<8x128xf32>
      %c1073741824_i32 = arith.constant 1073741824 : i32
      %29 = vector.broadcast %c1073741824_i32 : i32 to vector<8x128xi32>
      %30 = arith.select %28, %20, %29 : vector<8x128xi1>, vector<8x128xi32>
      %cst_18 = arith.constant dense<2147483647> : vector<8xi32>
      %31 = vector.multi_reduction <minsi>, %30, %cst_18 [1] : vector<8x128xi32> to vector<8xi32>
      %32 = vector.shape_cast %31 : vector<8xi32> to vector<8x1xi32>
      %c0_i32_19 = arith.constant 0 : i32
      %33 = arith.cmpi eq, %arg1, %c0_i32_19 : i32
      %34 = arith.extui %33 : i1 to i32
      %c0_i32_20 = arith.constant 0 : i32
      %35 = arith.cmpi ne, %34, %c0_i32_20 : i32
      scf.if %35 {
        %c0_25 = arith.constant 0 : index
        %c0_26 = arith.constant 0 : index
        %42 = vector.load %arg9[%c0_25, %c0_26] : memref<8x1xf32, #tpu.memory_space<vmem>>, vector<8x1xf32>
        tpu.vector_store %arg9[%c0_25, %c0_26], %26 {strides = array<i32>} : memref<8x1xf32, #tpu.memory_space<vmem>>, vector<8x1xf32>,
        %c0_27 = arith.constant 0 : index
        %c0_28 = arith.constant 0 : index
        %43 = vector.load %arg10[%c0_27, %c0_28] : memref<8x1xi32, #tpu.memory_space<vmem>>, vector<8x1xi32>
        tpu.vector_store %arg10[%c0_27, %c0_28], %32 {strides = array<i32>} : memref<8x1xi32, #tpu.memory_space<vmem>>, vector<8x1xi32>,
      } else {
      }
      %c0_i32_21 = arith.constant 0 : i32
      %36 = arith.cmpi sgt, %arg1, %c0_i32_21 : i32
      %37 = arith.extui %36 : i1 to i32
      %c0_i32_22 = arith.constant 0 : i32
      %38 = arith.cmpi ne, %37, %c0_i32_22 : i32
      scf.if %38 {
        %c0_25 = arith.constant 0 : index
        %c0_26 = arith.constant 0 : index
        %42 = vector.load %arg9[%c0_25, %c0_26] : memref<8x1xf32, #tpu.memory_space<vmem>>, vector<8x1xf32>
        %43 = arith.cmpf ogt, %26, %42 : vector<8x1xf32>
        %c0_27 = arith.constant 0 : index
        %c0_28 = arith.constant 0 : index
        %44 = vector.load %arg10[%c0_27, %c0_28] : memref<8x1xi32, #tpu.memory_space<vmem>>, vector<8x1xi32>
        %45 = arith.select %43, %32, %44 : vector<8x1xi1>, vector<8x1xi32>
        %c0_29 = arith.constant 0 : index
        %c0_30 = arith.constant 0 : index
        %46 = vector.load %arg10[%c0_29, %c0_30] : memref<8x1xi32, #tpu.memory_space<vmem>>, vector<8x1xi32>
        tpu.vector_store %arg10[%c0_29, %c0_30], %45 {strides = array<i32>} : memref<8x1xi32, #tpu.memory_space<vmem>>, vector<8x1xi32>,
        %c0_31 = arith.constant 0 : index
        %c0_32 = arith.constant 0 : index
        %47 = vector.load %arg9[%c0_31, %c0_32] : memref<8x1xf32, #tpu.memory_space<vmem>>, vector<8x1xf32>
        %48 = arith.maximumf %26, %47 : vector<8x1xf32>
        %c0_33 = arith.constant 0 : index
        %c0_34 = arith.constant 0 : index
        %49 = vector.load %arg9[%c0_33, %c0_34] : memref<8x1xf32, #tpu.memory_space<vmem>>, vector<8x1xf32>
        tpu.vector_store %arg9[%c0_33, %c0_34], %48 {strides = array<i32>} : memref<8x1xf32, #tpu.memory_space<vmem>>, vector<8x1xf32>,
      } else {
      }
      %c0_i32_23 = arith.constant 0 : i32
      %39 = arith.cmpi eq, %arg1, %c0_i32_23 : i32
      %40 = arith.extui %39 : i1 to i32
      %c0_i32_24 = arith.constant 0 : i32
      %41 = arith.cmpi ne, %40, %c0_i32_24 : i32
      scf.if %41 {
        %c0_25 = arith.constant 0 : index
        %c0_26 = arith.constant 0 : index
        %42 = vector.load %arg10[%c0_25, %c0_26] : memref<8x1xi32, #tpu.memory_space<vmem>>, vector<8x1xi32>
        %c0_27 = arith.constant 0 : index
        %c0_28 = arith.constant 0 : index
        %43 = vector.load %arg7[%c0_27, %c0_28] : memref<8x1xi32, #tpu.memory_space<vmem>>, vector<8x1xi32>
        tpu.vector_store %arg7[%c0_27, %c0_28], %42 {strides = array<i32>} : memref<8x1xi32, #tpu.memory_space<vmem>>, vector<8x1xi32>,
      } else {
      }
    } else {
    }
    return
  }
  func.func @transform_0(%arg0: i32, %arg1: i32, %arg2: i32) -> (i32, i32) {
    %c0_i32 = arith.constant 0 : i32
    return %arg0, %arg2 : i32, i32
  }
  func.func @transform_1(%arg0: i32, %arg1: i32, %arg2: i32) -> (i32, i32) {
    %c0_i32 = arith.constant 0 : i32
    return %arg2, %arg1 : i32, i32
  }
  func.func @transform_2(%arg0: i32, %arg1: i32, %arg2: i32) -> (i32, i32) {
    %c0_i32 = arith.constant 0 : i32
    %c0_i32_0 = arith.constant 0 : i32
    return %c0_i32, %arg1 : i32, i32
  }
  func.func @transform_3(%arg0: i32, %arg1: i32, %arg2: i32) -> (i32, i32) {
    %c0_i32 = arith.constant 0 : i32
    return %arg0, %arg1 : i32, i32
  }
  func.func @transform_4(%arg0: i32, %arg1: i32, %arg2: i32) -> (i32, i32) {
    %c0_i32 = arith.constant 0 : i32
    %c0_i32_0 = arith.constant 0 : i32
    return %arg0, %c0_i32 : i32, i32
  }
}

</mosaic_0001>

<bundles_post_ra>
// kernel: tpu_custom_call.1
= control target key start
LH: loop header
LB: loop body
LE: loop exit
PB: predicated region body
PF: predicated region fallthrough
CT: control target
= control target key end

     0   :  { %10 = vsyncpa [#allocation6], 0  ;;  %s306_s0 = inlined_call_operand.hbm [shape: f32[8,128], index: 0, kind: input, shape index: {}]   ;;  %s307_s1 = inlined_call_operand.hbm [shape: f32[128,128], index: 1, kind: input, shape index: {}]   ;;  %s308_s2 = inlined_call_operand.vmem [shape: f32[1,128], index: 2, kind: input, shape index: {}]   ;;  %s309_s3 = inlined_call_operand.hbm [shape: f32[8,128], index: 3, kind: output, shape index: {0}]   ;;  %s310_s4 = inlined_call_operand.vmem [shape: s32[8,1], index: 4, kind: output, shape index: {1}]  }
   0x1   :  { %11 = vsyncpa [#allocation9], 0 }
   0x2   :  { %12 = vsyncpa [#allocation7], 0  ;;  %s18_s17 = sshll.u32 %s306_s0, 4  ;;  %s259_s18 = smov [#allocation5]   ;;  %s19_s17 = int_to_ptr.hbm [resolvable:$true] %s18_s17 }
   0x3   :  { %s20_s19 = sshll.u32 %s259_s18, 4  ;;  %s28_s22 = sshll.u32 %s307_s1, 4  ;;  %s21_s19 = int_to_ptr.vmem [resolvable:$true] %s20_s19  ;;  %s29_s22 = int_to_ptr.hbm [resolvable:$true] %s28_s22 }
   0x4   :  { %23 = dma.hbm_to_vmem [thread:$0]  %s19_s17, 128, %s21_s19, [#allocation6]  }
   0x5   :  { %s260_s23 = smov [#allocation8]   ;;  %s261_s25 = smov 128  }
   0x6   :  { %s30_s24 = sshll.u32 %s260_s23, 4  ;;  %s262_s26 = smov 8   ;;  %s31_s24 = int_to_ptr.vmem [resolvable:$true] %s30_s24 }
   0x7   :  { %36 = dma.hbm_to_vmem [thread:$0]  %s29_s22, 2048, %s31_s24, [#allocation9], %s261_s25, %s261_s25, %s262_s26  }
   0x8   :  { %253 = dma.done.wait [#allocation6], 128  }
   0x9   :  { %254 = vsyncadd [#allocation6], 4294967168 }
   0xa   :  { %255 = dma.done.wait [#allocation9], 2048  }
   0xb   :  { %256 = vsyncadd [#allocation9], 4294965248  ;;  %v69_v0 = vld [vmem:[#allocation8 + $0x78] sm:$0xff]  ;;  %v68_v1 = vld [vmem:[#allocation8 + $0x70] sm:$0xff]  ;;  %v103_v17 = vlaneseq  ;;  %vm131_vm1 = vcmask 7168   ;;  %s263_s27 = smov [#allocation10]  }
   0xc   :  { %70 = vmatpush.msra.mxu0 %v69_v0  ;;  %v67_v2 = vld [vmem:[#allocation8 + $0x68] sm:$0xff]  ;;  %v66_v3 = vld [vmem:[#allocation8 + $0x60] sm:$0xff]  ;;  %v65_v4 = vld [vmem:[#allocation8 + $0x58] sm:$0xff]  ;;  %s158_s28 = sshll.u32 %s263_s27, 4  ;;  %s160_s30 = sshll.u32 %s309_s3, 4  ;;  %s159_s28 = int_to_ptr.vmem [resolvable:$true] %s158_s28  ;;  %s161_s30 = int_to_ptr.hbm [resolvable:$true] %s160_s30 }
   0xd   :  { %v64_v5 = vld [vmem:[#allocation8 + $0x50] sm:$0xff]  ;;  %v63_v6 = vld [vmem:[#allocation8 + $0x48] sm:$0xff]  ;;  %v62_v7 = vld [vmem:[#allocation8 + $0x40] sm:$0xff]  ;;  %v104_v18 = vand.u32 127, %v103_v17 }
   0xe   :  { %71 = vmatpush.msra.mxu0 %v68_v1  ;;  %v61_v8 = vld [vmem:[#allocation8 + $0x38] sm:$0xff]  ;;  %v60_v9 = vld [vmem:[#allocation8 + $0x30] sm:$0xff]  ;;  %v59_v10 = vld [vmem:[#allocation8 + $0x28] sm:$0xff] }
   0xf   :  { %v58_v11 = vld [vmem:[#allocation8 + $0x20] sm:$0xff]  ;;  %v57_v12 = vld [vmem:[#allocation8 + $0x18] sm:$0xff]  ;;  %v56_v13 = vld [vmem:[#allocation8 + $0x10] sm:$0xff]  ;;  %vm107_vm0 = vcmp.lt.s32.totalorder %v104_v18, 16 }
  0x10   :  { %72 = vmatpush.msra.mxu0 %v67_v2  ;;  %v55_v14 = vld [vmem:[#allocation8 + $0x8] sm:$0xff]  ;;  %v54_v15 = vld [vmem:[#allocation8] sm:$0xff]  ;;  %v53_v16 = vld [vmem:[#allocation5] sm:$0xff] }
  0x11   :  { %v180_v19 = vld [vmem:[%s308_s2] ss:$0 sm:$0xff] }
  0x12   :  { %73 = vmatpush.msra.mxu0 %v66_v3 }
  0x14   :  { %74 = vmatpush.msra.mxu0 %v65_v4 }
  0x16   :  { %75 = vmatpush.msra.mxu0 %v64_v5 }
  0x18   :  { %76 = vmatpush.msra.mxu0 %v63_v6 }
  0x1a   :  { %77 = vmatpush.msra.mxu0 %v62_v7 }
  0x1c   :  { %78 = vmatpush.msra.mxu0 %v61_v8 }
  0x1e   :  { %79 = vmatpush.msra.mxu0 %v60_v9 }
  0x20   :  { %80 = vmatpush.msra.mxu0 %v59_v10 }
  0x22   :  { %81 = vmatpush.msra.mxu0 %v58_v11 }
  0x24   :  { %82 = vmatpush.msra.mxu0 %v57_v12 }
  0x26   :  { %83 = vmatpush.msra.mxu0 %v56_v13 }
  0x28   :  { %84 = vmatpush.msra.mxu0 %v55_v14 }
  0x2a   :  { %85 = vmatpush.msra.mxu0 %v54_v15 }
  0x2b   :  { %86 = vmatmul.f32.vlgmr.msra.gmra.mxu0 %v53_v16 }
  0xa8   :  { %v87_v20 = vpop.f32.mrf.mxu0 }
  0xa9   :  { %v100_v21 = vadd.f32 %v180_v19, %v87_v20 }
  0xab   :  { %101 = vst [vmem:[#allocation10] sm:$0xff] %v100_v21  ;;  %v108_v22 = vsel %vm107_vm0, %v100_v21, -inf }
  0xac   :  { %109 = vmax.xlane.f32.xlu0 %v108_v22  ;;  %163 = dma.vmem_to_hbm [thread:$0]  %s159_s28, 128, %s161_s30, [#allocation7]  }
 0x11f   :  { %v110_v23 = vpop.xlane.xlu0 %109 }
 0x120   :  { %vm111_vm2 = vcmp.eq.f32.partialorder %v108_v22, %v110_v23 }
 0x121   :  { %v112_v24 = vsel %vm111_vm2, %v104_v18, 1073741824 }
 0x122   :  { %v114_v25 = vshra.s32 %v112_v24, 16  ;;  %v113_v27 = vand.u32 65535, %v112_v24 }
 0x124   :  { %v116_v26 = vcvt.s32.f32 %v114_v25  ;;  %v115_v29 = vcvt.s32.f32 %v113_v27 }
 0x126   :  { %117 = vmin.xlane.f32.xlu0 %v116_v26 }
 0x199   :  { %v118_v28 = vpop.xlane.xlu0 %117 }
 0x19a   :  { %vm119_vm3 = vcmp.eq.f32.partialorder %v116_v26, %v118_v28  ;;  %v124_v31 = vcvt.f32.s32 %v118_v28 }
 0x19b   :  { %v120_v30 = vsel %vm119_vm3, %v115_v29, inf }
 0x19c   :  { %121 = vmin.xlane.f32.xlu1 %v120_v30  ;;  %v125_v33 = vshll.u32 %v124_v31, 16 }
 0x20f   :  { %v122_v32 = vpop.xlane.xlu1 %121 }
 0x210   :  { %v123_v34 = vcvt.f32.s32 %v122_v32 }
 0x212   :  { %v126_v35 = vadd.s32 %v125_v33, %v123_v34 }
 0x214   :  { %133 = vst.msk [vmem:[#allocation4] sm:$0xff] %vm131_vm1, %v126_v35 }
 0x21b   :  { %v150_v36 = vld [vmem:[#allocation4] sm:$0xff] }
 0x21c   :  { %152 = vst.msk [vmem:[%s310_s4] sm:$0xff] %vm131_vm1, %v150_v36 }
 0x21d   :  { %257 = dma.done.wait [#allocation7], 128  }
 0x21e   :  { %258 = vsyncadd [#allocation7], 4294967168 }
 0x21f   :  { %172 = vsyncpa [#allocation6], 1 }
 0x220   :  { %173 = vsyncpa [#allocation9], 1 }
 0x221   :  { %174 = vsyncpa [#allocation7], 1 }

</bundles_post_ra>
